<compile_context>
chip_gen: v7x
topology: tpu7x:2x2x1
jax: 0.10.0
libtpu: 0.0.40
codegen_flags: <defaults>
</compile_context>

<pallas_src>
import jax
import jax.numpy as jnp
from jax.experimental import pallas as pl
from jax.experimental.pallas import tpu as pltpu


def _round_up(x, m):
    return ((x + m - 1) // m) * m


def _mlp_kernel(reps_ref, inp_ref, w1r_ref, w1l_ref, b1_ref, w2_ref, b2_ref,
                o_ref):
    # reps_ref : (tm, R)   f32      inp_ref : (tm, L)   f32
    # w1r_ref  : (R, Hp)   bf16     w1l_ref : (L, Hp)   bf16
    # b1_ref   : (1, Hp)   f32
    # w2_ref   : (Hp, tn)  bf16     b2_ref  : (1, tn)   f32
    # o_ref    : (tm, tn)  f32 (or bf16)
    reps = reps_ref[...].astype(jnp.bfloat16)   # cast in-kernel: no extra HBM pass
    lats = inp_ref[...].astype(jnp.bfloat16)
    # First linear as a split contraction (replaces concat([reps, inputs], 1)).
    h = jnp.dot(reps, w1r_ref[...], preferred_element_type=jnp.float32)
    h = h + jnp.dot(lats, w1l_ref[...], preferred_element_type=jnp.float32)
    h = jnp.maximum(h + b1_ref[...], 0.0)       # bias + ReLU in f32
    # Dropout: identity in eval mode.
    out = jnp.dot(h.astype(w2_ref.dtype), w2_ref[...],
                  preferred_element_type=jnp.float32)
    o_ref[...] = (out + b2_ref[...]).astype(o_ref.dtype)


def prepare_params(params, node_rep_size, *, tn=1024):
    """One-time parameter prep.

    Splits W1 into the reps/latent blocks, zero-pads the hidden dim to a
    128-multiple and the vocab dim to a multiple of the vocab tile `tn`
    (so the call-time grid never has to shrink its tile), and casts the
    matmul weights to bf16 (accumulation stays f32 inside the kernel).
    """
    w1, b1, w2, b2 = params
    d_in, hidden = w1.shape
    hidden2, vocab = w2.shape
    assert hidden == hidden2 and b1.shape == (hidden,) and b2.shape == (vocab,)
    latent = d_in - node_rep_size

    hp = _round_up(hidden, 128)
    v128 = _round_up(vocab, 128)
    tn_eff = min(max(128, (tn // 128) * 128), v128)   # lane-dense vocab tile
    vp = _round_up(v128, tn_eff)                      # pad V to a tile multiple

    w1r = jnp.pad(w1[:node_rep_size], ((0, 0), (0, hp - hidden)))
    w1l = jnp.pad(w1[node_rep_size:], ((0, 0), (0, hp - hidden)))
    b1p = jnp.pad(b1, (0, hp - hidden)).reshape(1, hp).astype(jnp.float32)
    w2p = jnp.pad(w2, ((0, hp - hidden), (0, vp - vocab)))
    b2p = jnp.pad(b2, (0, vp - vocab)).reshape(1, vp).astype(jnp.float32)

    return dict(
        w1r=w1r.astype(jnp.bfloat16),
        w1l=w1l.astype(jnp.bfloat16),
        b1=b1p,
        w2=w2p.astype(jnp.bfloat16),
        b2=b2p,
        tn=tn_eff,
        node_rep_size=node_rep_size,
        latent_size=latent,
        vocab_size=vocab,
    )


def node_predictor_forward(frontier_node_reps, inputs, prepared, *,
                           tm=512, out_dtype=jnp.float32):
    """frontier_node_reps: (B, R), inputs: (B, L) -> logits (B, V)."""
    w1r, w1l = prepared["w1r"], prepared["w1l"]
    b1, w2, b2 = prepared["b1"], prepared["w2"], prepared["b2"]
    R = prepared["node_rep_size"]
    L = prepared["latent_size"]
    V = prepared["vocab_size"]
    tn_eff = prepared["tn"]
    hp, vp = w2.shape

    B = frontier_node_reps.shape[0]
    assert frontier_node_reps.shape == (B, R) and inputs.shape == (B, L)

    # Row tile: multiple of 16 (bf16 sublane packing), clamped to the batch so
    # tiny batches do not pay for a 512-row tile.
    tm_eff = max(16, (min(tm, _round_up(B, 16)) // 16) * 16)
    b_pad = _round_up(B, tm_eff)

    reps, lats = frontier_node_reps, inputs
    if b_pad != B:  # pad only when the batch is ragged w.r.t. the row tile
        reps = jnp.pad(reps, ((0, b_pad - B), (0, 0)))
        lats = jnp.pad(lats, ((0, b_pad - B), (0, 0)))

    num_i = b_pad // tm_eff          # row tiles
    num_j = vp // tn_eff             # vocab tiles
    # j outer / i inner: the W2 block index is constant across the inner loop,
    # so W2 is streamed from HBM exactly once per call.
    grid = (num_j, num_i)

    out = pl.pallas_call(
        _mlp_kernel,
        out_shape=jax.ShapeDtypeStruct((b_pad, vp), out_dtype),
        grid_spec=pltpu.PrefetchScalarGridSpec(
            num_scalar_prefetch=0,
            grid=grid,
            in_specs=[
                pl.BlockSpec((tm_eff, R), lambda j, i: (i, 0)),    # reps tile
                pl.BlockSpec((tm_eff, L), lambda j, i: (i, 0)),    # latent tile
                pl.BlockSpec((R, hp), lambda j, i: (0, 0)),        # W1[:R]
                pl.BlockSpec((L, hp), lambda j, i: (0, 0)),        # W1[R:]
                pl.BlockSpec((1, hp), lambda j, i: (0, 0)),        # b1
                pl.BlockSpec((hp, tn_eff), lambda j, i: (0, j)),   # W2 vocab tile
                pl.BlockSpec((1, tn_eff), lambda j, i: (0, j)),    # b2 vocab tile
            ],
            out_specs=pl.BlockSpec((tm_eff, tn_eff), lambda j, i: (i, j)),
        ),
        compiler_params=pltpu.CompilerParams(
            dimension_semantics=("parallel", "parallel"),
            # 40 MiB is safe on v7x (64 MiB physical VMEM) and ample for the
            # default tm=512 / tn=1024 working set on all generations.
            vmem_limit_bytes=40 * 1024 * 1024,
        ),
    )(reps, lats, w1r, w1l, b1, w2, b2)

    if b_pad != B or vp != V:        # slice only when padding actually happened
        out = out[:B, :V]
    return out


def init_params(key, node_rep_size, latent_size, vocab_size):
    """Deterministic synthetic parameters (not a checkpoint load)."""
    k1, k2, k3, k4 = jax.random.split(key, 4)
    d_in = node_rep_size + latent_size
    s1 = 1.0 / jnp.sqrt(jnp.float32(d_in))
    s2 = 1.0 / jnp.sqrt(jnp.float32(node_rep_size))
    w1 = jax.random.uniform(k1, (d_in, node_rep_size), jnp.float32, -s1, s1)
    b1 = jax.random.uniform(k2, (node_rep_size,), jnp.float32, -s1, s1)
    w2 = jax.random.uniform(k3, (node_rep_size, vocab_size), jnp.float32, -s2, s2)
    b2 = jax.random.uniform(k4, (vocab_size,), jnp.float32, -s2, s2)
    return w1, b1, w2, b2


def _reference(reps, lats, params):
    # Pure-JAX reference following the same bf16-matmul / f32-accumulate path.
    w1, b1, w2, b2 = params
    x = jnp.concatenate([reps, lats], axis=1).astype(jnp.bfloat16)
    h = jnp.dot(x, w1.astype(jnp.bfloat16),
                preferred_element_type=jnp.float32) + b1
    h = jnp.maximum(h, 0.0)
    return jnp.dot(h.astype(jnp.bfloat16), w2.astype(jnp.bfloat16),
                   preferred_element_type=jnp.float32) + b2


if __name__ == "__main__":
    # Small shapes consistent with the module's forward.
    batch = 8
    node_rep_size = 32
    latent_size = 32
    vocab_size = 128

    key = jax.random.PRNGKey(0)
    k_reps, k_lat, k_par = jax.random.split(key, 3)
    frontier_node_reps = jax.random.normal(
        k_reps, (batch, node_rep_size), jnp.float32)
    latent_inputs = jax.random.normal(
        k_lat, (batch, latent_size), jnp.float32)
    params = init_params(k_par, node_rep_size, latent_size, vocab_size)
    prepared = prepare_params(params, node_rep_size)

    logits = node_predictor_forward(frontier_node_reps, latent_inputs, prepared)
    logits = jax.block_until_ready(logits)

    ref = _reference(frontier_node_reps, latent_inputs, params)
    assert logits.shape == (batch, vocab_size)
    assert jnp.allclose(logits, ref, atol=5e-3, rtol=5e-3)

    # Ragged case: batch / vocab not tile multiples (exercises pad + slice).
    batch2, vocab2 = 6, 100
    k5, k6, k7 = jax.random.split(jax.random.PRNGKey(1), 3)
    reps2 = jax.random.normal(k5, (batch2, node_rep_size), jnp.float32)
    lat2 = jax.random.normal(k6, (batch2, latent_size), jnp.float32)
    params2 = init_params(k7, node_rep_size, latent_size, vocab2)
    prepared2 = prepare_params(params2, node_rep_size)
    logits2 = jax.block_until_ready(
        node_predictor_forward(reps2, lat2, prepared2))
    ref2 = _reference(reps2, lat2, params2)
    assert logits2.shape == (batch2, vocab2)
    assert jnp.allclose(logits2, ref2, atol=5e-3, rtol=5e-3)

    print("KERNEL_OK")
</pallas_src>

<mosaic_0001>
module attributes {stable_mosaic.version = 11 : i64} {
  func.func @_mlp_kernel(%arg0: i32, %arg1: i32, %arg2: memref<16x32xf32, #tpu.memory_space<vmem>>, %arg3: memref<16x32xf32, #tpu.memory_space<vmem>>, %arg4: memref<32x128xbf16, #tpu.memory_space<vmem>>, %arg5: memref<32x128xbf16, #tpu.memory_space<vmem>>, %arg6: memref<1x128xf32, #tpu.memory_space<vmem>>, %arg7: memref<128x128xbf16, #tpu.memory_space<vmem>>, %arg8: memref<1x128xf32, #tpu.memory_space<vmem>>, %arg9: memref<16x128xf32, #tpu.memory_space<vmem>>) attributes {dimension_semantics = [#tpu.dimension_semantics<parallel>, #tpu.dimension_semantics<parallel>], iteration_bounds = array<i64: 1, 1>, scalar_prefetch = 0 : i64, scratch_operands = 0 : i64, tpu.core_type = #tpu.core_type<tc>, window_params = [{transform_indices = @transform_0, window_bounds = array<i64: 16, 32>}, {transform_indices = @transform_1, window_bounds = array<i64: 16, 32>}, {pipeline_mode = #tpu.pipeline_mode<synchronous>, transform_indices = @transform_2, window_bounds = array<i64: 32, 128>}, {pipeline_mode = #tpu.pipeline_mode<synchronous>, transform_indices = @transform_3, window_bounds = array<i64: 32, 128>}, {pipeline_mode = #tpu.pipeline_mode<synchronous>, transform_indices = @transform_4, window_bounds = array<i64: 1, 128>}, {transform_indices = @transform_5, window_bounds = array<i64: 128, 128>}, {transform_indices = @transform_6, window_bounds = array<i64: 1, 128>}, {transform_indices = @transform_7, window_bounds = array<i64: 16, 128>}]} {
    %c0 = arith.constant 0 : index
    %c0_0 = arith.constant 0 : index
    %0 = vector.load %arg2[%c0, %c0_0] : memref<16x32xf32, #tpu.memory_space<vmem>>, vector<16x32xf32>
    %1 = arith.truncf %0 : vector<16x32xf32> to vector<16x32xbf16>
    %c0_1 = arith.constant 0 : index
    %c0_2 = arith.constant 0 : index
    %2 = vector.load %arg3[%c0_1, %c0_2] : memref<16x32xf32, #tpu.memory_space<vmem>>, vector<16x32xf32>
    %3 = arith.truncf %2 : vector<16x32xf32> to vector<16x32xbf16>
    %c0_3 = arith.constant 0 : index
    %c0_4 = arith.constant 0 : index
    %4 = vector.load %arg4[%c0_3, %c0_4] : memref<32x128xbf16, #tpu.memory_space<vmem>>, vector<32x128xbf16>
    %cst = arith.constant dense<0.000000e+00> : vector<16x128xf32>
    %5 = tpu.matmul %1, %4, %cst {dimension_numbers = #tpu.dot_dimension_numbers<[1], [0], [0], [1], [0, 0, 1, 1], [], []>} : vector<16x32xbf16>, vector<32x128xbf16>, vector<16x128xf32> -> vector<16x128xf32>
    %c0_5 = arith.constant 0 : index
    %c0_6 = arith.constant 0 : index
    %6 = vector.load %arg5[%c0_5, %c0_6] : memref<32x128xbf16, #tpu.memory_space<vmem>>, vector<32x128xbf16>
    %cst_7 = arith.constant dense<0.000000e+00> : vector<16x128xf32>
    %7 = tpu.matmul %3, %6, %cst_7 {dimension_numbers = #tpu.dot_dimension_numbers<[1], [0], [0], [1], [0, 0, 1, 1], [], []>} : vector<16x32xbf16>, vector<32x128xbf16>, vector<16x128xf32> -> vector<16x128xf32>
    %8 = arith.addf %5, %7 : vector<16x128xf32>
    %c0_8 = arith.constant 0 : index
    %c0_9 = arith.constant 0 : index
    %9 = vector.load %arg6[%c0_8, %c0_9] : memref<1x128xf32, #tpu.memory_space<vmem>>, vector<1x128xf32>
    %10 = vector.broadcast %9 : vector<1x128xf32> to vector<16x128xf32>
    %11 = arith.addf %8, %10 : vector<16x128xf32>
    %cst_10 = arith.constant 0.000000e+00 : f32
    %12 = vector.broadcast %cst_10 : f32 to vector<16x128xf32>
    %13 = arith.maximumf %11, %12 : vector<16x128xf32>
    %14 = arith.truncf %13 : vector<16x128xf32> to vector<16x128xbf16>
    %c0_11 = arith.constant 0 : index
    %c0_12 = arith.constant 0 : index
    %15 = vector.load %arg7[%c0_11, %c0_12] : memref<128x128xbf16, #tpu.memory_space<vmem>>, vector<128x128xbf16>
    %cst_13 = arith.constant dense<0.000000e+00> : vector<16x128xf32>
    %16 = tpu.matmul %14, %15, %cst_13 {dimension_numbers = #tpu.dot_dimension_numbers<[1], [0], [0], [1], [0, 0, 1, 1], [], []>} : vector<16x128xbf16>, vector<128x128xbf16>, vector<16x128xf32> -> vector<16x128xf32>
    %c0_14 = arith.constant 0 : index
    %c0_15 = arith.constant 0 : index
    %17 = vector.load %arg8[%c0_14, %c0_15] : memref<1x128xf32, #tpu.memory_space<vmem>>, vector<1x128xf32>
    %18 = vector.broadcast %17 : vector<1x128xf32> to vector<16x128xf32>
    %19 = arith.addf %16, %18 : vector<16x128xf32>
    %c0_16 = arith.constant 0 : index
    %c0_17 = arith.constant 0 : index
    %20 = vector.load %arg9[%c0_16, %c0_17] : memref<16x128xf32, #tpu.memory_space<vmem>>, vector<16x128xf32>
    tpu.vector_store %arg9[%c0_16, %c0_17], %19 {strides = array<i32>} : memref<16x128xf32, #tpu.memory_space<vmem>>, vector<16x128xf32>,
    return
  }
  func.func @transform_0(%arg0: i32, %arg1: i32) -> (i32, i32) {
    %c0_i32 = arith.constant 0 : i32
    %c0_i32_0 = arith.constant 0 : i32
    return %arg1, %c0_i32 : i32, i32
  }
  func.func @transform_1(%arg0: i32, %arg1: i32) -> (i32, i32) {
    %c0_i32 = arith.constant 0 : i32
    %c0_i32_0 = arith.constant 0 : i32
    return %arg1, %c0_i32 : i32, i32
  }
  func.func @transform_2(%arg0: i32, %arg1: i32) -> (i32, i32) {
    %c0_i32 = arith.constant 0 : i32
    %c0_i32_0 = arith.constant 0 : i32
    %c0_i32_1 = arith.constant 0 : i32
    return %c0_i32, %c0_i32_0 : i32, i32
  }
  func.func @transform_3(%arg0: i32, %arg1: i32) -> (i32, i32) {
    %c0_i32 = arith.constant 0 : i32
    %c0_i32_0 = arith.constant 0 : i32
    %c0_i32_1 = arith.constant 0 : i32
    return %c0_i32, %c0_i32_0 : i32, i32
  }
  func.func @transform_4(%arg0: i32, %arg1: i32) -> (i32, i32) {
    %c0_i32 = arith.constant 0 : i32
    %c0_i32_0 = arith.constant 0 : i32
    %c0_i32_1 = arith.constant 0 : i32
    return %c0_i32, %c0_i32_0 : i32, i32
  }
  func.func @transform_5(%arg0: i32, %arg1: i32) -> (i32, i32) {
    %c0_i32 = arith.constant 0 : i32
    %c0_i32_0 = arith.constant 0 : i32
    return %c0_i32, %arg0 : i32, i32
  }
  func.func @transform_6(%arg0: i32, %arg1: i32) -> (i32, i32) {
    %c0_i32 = arith.constant 0 : i32
    %c0_i32_0 = arith.constant 0 : i32
    return %c0_i32, %arg0 : i32, i32
  }
  func.func @transform_7(%arg0: i32, %arg1: i32) -> (i32, i32) {
    %c0_i32 = arith.constant 0 : i32
    return %arg1, %arg0 : i32, i32
  }
}

</mosaic_0001>

<bundles_post_ra>
// kernel: tpu_custom_call.1
= control target key start
LH: loop header
LB: loop body
LE: loop exit
PB: predicated region body
PF: predicated region fallthrough
CT: control target
= control target key end

     0   :  { %12 = vsyncpa [#allocation3], 0  ;;  %s752_s0 = inlined_call_operand.hbm [shape: f32[16,32], index: 0, kind: input, shape index: {}]   ;;  %s753_s1 = inlined_call_operand.hbm [shape: f32[16,32], index: 1, kind: input, shape index: {}]   ;;  %s754_s2 = inlined_call_operand.hbm [shape: bf16[32,128], index: 2, kind: input, shape index: {}]   ;;  %s755_s3 = inlined_call_operand.hbm [shape: bf16[32,128], index: 3, kind: input, shape index: {}]   ;;  %s756_s4 = inlined_call_operand.vmem [shape: f32[1,128], index: 4, kind: input, shape index: {}]   ;;  %s757_s5 = inlined_call_operand.hbm [shape: bf16[128,128], index: 5, kind: input, shape index: {}]   ;;  %s758_s6 = inlined_call_operand.vmem [shape: f32[1,128], index: 6, kind: input, shape index: {}]   ;;  %s759_s7 = inlined_call_operand.hbm [shape: f32[16,128], index: 7, kind: output, shape index: {}]  }
   0x1   :  { %13 = vsyncpa [#allocation6], 0 }
   0x2   :  { %14 = vsyncpa [#allocation9], 0 }
   0x3   :  { %15 = vsyncpa [#allocation4], 0  ;;  %s599_s24 = smov [#allocation5]   ;;  %s459_s28 = scalar_lea.hbm %s753_s1, 256 }
   0x4   :  { %s33_s25 = sshll.u32 %s599_s24, 4  ;;  %p460_p0 = scmp.ne.s32.totalorder %s753_s1, %s459_s28  ;;  %s34_s25 = int_to_ptr.vmem [resolvable:$true] %s33_s25 }
   0x5   :  { %p463_p1 = scmp.lt.u32.totalorder %s459_s28, %s753_s1 }
   0x7   :  { %p465_p2 = pnand %p463_p1, %p460_p0 }
   0x9   :  { %468 = shalt.err (!%p465_p2)
}
   0xa   :  { %s469_s10 = scalar_lea.vmem %s34_s25, 256  ;;  %p474_p4 = scmp.lt.s32.totalorder %s34_s25, %s34_s25 }
   0xb   :  { %p470_p3 = scmp.ne.s32.totalorder %s34_s25, %s469_s10  ;;  %p475_p5 = scmp.lt.s32.totalorder %s469_s10, %s469_s10 }
   0xd   :  { %p476_p6 = por %p475_p5, %p474_p4 }
   0xf   :  { %p477_p7 = pnand %p476_p6, %p470_p3 }
  0x11   :  { %480 = shalt.err (!%p477_p7)
}
  0x12   :  { %s600_s11 = smov 128   ;;  %s601_s12 = smov 8  }
  0x13   :  { %39 = dma.hbm_to_vmem [thread:$0]  %s753_s1, 256, %s34_s25, [#allocation6], %s600_s11, %s600_s11, %s601_s12  }
  0x14   :  { %s602_s15 = smov [#allocation8]   ;;  %s603_s17 = smov [#allocation2]  }
  0x15   :  { %s57_s16 = sshll.u32 %s602_s15, 4  ;;  %s21_s18 = sshll.u32 %s603_s17, 4  ;;  %s58_s16 = int_to_ptr.vmem [resolvable:$true] %s57_s16  ;;  %s22_s18 = int_to_ptr.vmem [resolvable:$true] %s21_s18 }
  0x16   :  { %s481_s21 = scalar_lea.hbm %s755_s3, 256 }
  0x17   :  { %p482_p8 = scmp.ne.s32.totalorder %s755_s3, %s481_s21  ;;  %p485_p9 = scmp.lt.u32.totalorder %s481_s21, %s755_s3 }
  0x19   :  { %p487_p10 = pnand %p485_p9, %p482_p8 }
  0x1b   :  { %490 = shalt.err (!%p487_p10)
}
  0x1c   :  { %s491_s1 = scalar_lea.vmem %s58_s16, 256  ;;  %p496_p12 = scmp.lt.s32.totalorder %s58_s16, %s58_s16 }
  0x1d   :  { %p492_p11 = scmp.ne.s32.totalorder %s58_s16, %s491_s1  ;;  %p497_p13 = scmp.lt.s32.totalorder %s491_s1, %s491_s1 }
  0x1f   :  { %p498_p0 = por %p497_p13, %p496_p12 }
  0x21   :  { %p499_p1 = pnand %p498_p0, %p492_p11 }
  0x23   :  { %502 = shalt.err (!%p499_p1)
}
  0x24   :  { %s604_s25 = smov 64   ;;  %s605_s27 = smov 4  }
  0x25   :  { %63 = dma.hbm_to_vmem [thread:$0]  %s755_s3, 256, %s58_s16, [#allocation9], %s604_s25, %s604_s25, %s605_s27  }
  0x26   :  { %s503_s9 = scalar_lea.hbm %s752_s0, 256 }
  0x27   :  { %p504_p2 = scmp.ne.s32.totalorder %s752_s0, %s503_s9  ;;  %p507_p3 = scmp.lt.u32.totalorder %s503_s9, %s752_s0 }
  0x29   :  { %p509_p4 = pnand %p507_p3, %p504_p2 }
  0x2b   :  { %512 = shalt.err (!%p509_p4)
}
  0x2c   :  { %s513_s17 = scalar_lea.vmem %s22_s18, 256  ;;  %p518_p6 = scmp.lt.s32.totalorder %s22_s18, %s22_s18 }
  0x2d   :  { %p514_p5 = scmp.ne.s32.totalorder %s22_s18, %s513_s17  ;;  %p519_p7 = scmp.lt.s32.totalorder %s513_s17, %s513_s17 }
  0x2f   :  { %p520_p8 = por %p519_p7, %p518_p6 }
  0x31   :  { %p521_p9 = pnand %p520_p8, %p514_p5 }
  0x33   :  { %524 = shalt.err (!%p521_p9)
}
  0x34   :  { %27 = dma.hbm_to_vmem [thread:$0]  %s752_s0, 256, %s22_s18, [#allocation3], %s600_s11, %s600_s11, %s601_s12  }
  0x35   :  { %s606_s19 = smov [#allocation7]   ;;  %s607_s21 = smov [#allocation10]  }
  0x36   :  { %s45_s20 = sshll.u32 %s606_s19, 4  ;;  %s71_s22 = sshll.u32 %s607_s21, 4  ;;  %s46_s20 = int_to_ptr.vmem [resolvable:$true] %s45_s20  ;;  %s72_s22 = int_to_ptr.vmem [resolvable:$true] %s71_s22 }
  0x37   :  { %s525_s26 = scalar_lea.hbm %s754_s2, 256 }
  0x38   :  { %p526_p10 = scmp.ne.s32.totalorder %s754_s2, %s525_s26  ;;  %p529_p11 = scmp.lt.u32.totalorder %s525_s26, %s754_s2 }
  0x3a   :  { %p531_p12 = pnand %p529_p11, %p526_p10 }
  0x3c   :  { %534 = shalt.err (!%p531_p12)
}
  0x3d   :  { %s535_s0 = scalar_lea.vmem %s46_s20, 256  ;;  %p540_p0 = scmp.lt.s32.totalorder %s46_s20, %s46_s20 }
  0x3e   :  { %p536_p13 = scmp.ne.s32.totalorder %s46_s20, %s535_s0  ;;  %p541_p1 = scmp.lt.s32.totalorder %s535_s0, %s535_s0 }
  0x40   :  { %p542_p2 = por %p541_p1, %p540_p0 }
  0x42   :  { %p543_p3 = pnand %p542_p2, %p536_p13 }
  0x44   :  { %546 = shalt.err (!%p543_p3)
}
  0x45   :  { %51 = dma.hbm_to_vmem [thread:$0]  %s754_s2, 256, %s46_s20, [#allocation6], %s604_s25, %s604_s25, %s605_s27  }
  0x46   :  { %s547_s13 = scalar_lea.hbm %s757_s5, 1024 }
  0x47   :  { %p548_p4 = scmp.ne.s32.totalorder %s757_s5, %s547_s13  ;;  %p551_p5 = scmp.lt.u32.totalorder %s547_s13, %s757_s5 }
  0x49   :  { %p553_p6 = pnand %p551_p5, %p548_p4 }
  0x4b   :  { %556 = shalt.err (!%p553_p6)
}
  0x4c   :  { %s557_s16 = scalar_lea.vmem %s72_s22, 1024  ;;  %p562_p8 = scmp.lt.s32.totalorder %s72_s22, %s72_s22 }
  0x4d   :  { %p558_p7 = scmp.ne.s32.totalorder %s72_s22, %s557_s16  ;;  %p563_p9 = scmp.lt.s32.totalorder %s557_s16, %s557_s16 }
  0x4f   :  { %p564_p10 = por %p563_p9, %p562_p8 }
  0x51   :  { %p565_p11 = pnand %p564_p10, %p558_p7 }
  0x53   :  { %568 = shalt.err (!%p565_p11)
}
  0x54   :  { %77 = dma.hbm_to_vmem [thread:$0]  %s757_s5, 1024, %s72_s22, [#allocation9], %s604_s25, %s604_s25, %s605_s27  }
  0x55   :  { %591 = dma.done.wait [#allocation3], 256  }
  0x56   :  { %592 = vsyncadd [#allocation3], 4294967040 }
  0x57   :  { %593 = dma.done.wait [#allocation6], 512  }
  0x58   :  { %594 = vsyncadd [#allocation6], 4294966784 }
  0x59   :  { %595 = dma.done.wait [#allocation9], 1280  }
  0x5a   :  { %596 = vsyncadd [#allocation9], 4294966016  ;;  %v608_v0 = vmov 0.0   ;;  %vm609_vm0 = vmmov 0   ;;  %v447_v1 = vld [vmem:[#allocation8] sm:$0xff]   ;;  %v448_v2 = vld [vmem:[#allocation8 + $0x8] sm:$0xff]  }
  0x5b   :  { %399 = vmatprep.subr.bf16.mxu1 %v608_v0  ;;  %403 = vmatprep.mubr.msk.bf16.mxu1 %vm609_vm0, %v608_v0  ;;  %v99_v3 = vld [vmem:[#allocation5] sm:$0xff]  ;;  %v100_v4 = vld [vmem:[#allocation5 + $0x8] sm:$0xff]  ;;  %v449_v6 = vld [vmem:[#allocation7] sm:$0xff]   ;;  %vm122_vm1 = vcmask 261120   ;;  %s610_s21 = smov [#allocation11]  }
  0x5c   :  { %415 = vmatprep.subr.bf16.mxu0 %v608_v0  ;;  %431 = vmatprep.mubr.msk.bf16.mxu0 %vm609_vm0, %v608_v0  ;;  %v101_v5 = vpack.c.bf16 %v100_v4, %v99_v3  ;;  %v451_v7 = vld [vmem:[#allocation10] sm:$0xff]   ;;  %v450_v8 = vld [vmem:[#allocation7 + $0x8] sm:$0xff]   ;;  %v453_v12 = vld [vmem:[#allocation10 + $0x10] sm:$0xff]   ;;  %s354_s22 = sshll.u32 %s610_s21, 4  ;;  %s355_s22 = int_to_ptr.vmem [resolvable:$true] %s354_s22 }
  0x5d   :  { %400 = vmatpush3.bf16.msra.mxu1 %v447_v1  ;;  %v96_v9 = vld [vmem:[#allocation2] sm:$0xff]  ;;  %v97_v10 = vld [vmem:[#allocation2 + $0x8] sm:$0xff]  ;;  %416 = vmatpush3.bf16.msra.mxu0 %v451_v7  ;;  %v454_v14 = vld [vmem:[#allocation10 + $0x18] sm:$0xff]   ;;  %p574_p13 = scmp.lt.s32.totalorder %s355_s22, %s355_s22 }
  0x5e   :  { %401 = vmatprep.subr.bf16.mxu1 %v608_v0  ;;  %v452_v11 = vld [vmem:[#allocation10 + $0x8] sm:$0xff]   ;;  %417 = vmatprep.subr.bf16.mxu0 %v608_v0  ;;  %v98_v13 = vpack.c.bf16 %v97_v10, %v96_v9  ;;  %v455_v15 = vld [vmem:[#allocation10 + $0x20] sm:$0xff]   ;;  %v457_v17 = vld [vmem:[#allocation10 + $0x30] sm:$0xff]  }
  0x5f   :  { %v456_v16 = vld [vmem:[#allocation10 + $0x28] sm:$0xff]   ;;  %v458_v18 = vld [vmem:[#allocation10 + $0x38] sm:$0xff]   ;;  %v374_v24 = vld [vmem:[%s756_s4] ss:$0 sm:$0xff]  ;;  %s569_s4 = scalar_lea.vmem %s355_s22, 256 }
  0x60   :  { %v375_v35 = vld [vmem:[%s758_s6] ss:$0 sm:$0xff]  ;;  %p570_p12 = scmp.ne.s32.totalorder %s355_s22, %s569_s4  ;;  %p575_p0 = scmp.lt.s32.totalorder %s569_s4, %s569_s4 }
  0x61   :  { %402 = vmatpush3.bf16.msra.mxu1 %v448_v2  ;;  %418 = vmatpush3.bf16.msra.mxu0 %v452_v11 }
  0x62   :  { %407 = vmatprep.subr.bf16.mxu1 %v608_v0  ;;  %419 = vmatprep.subr.bf16.mxu0 %v608_v0  ;;  %p576_p1 = por %p575_p0, %p574_p13 }
  0x64   :  { %404 = vmatmul.mubr.msk.bf16.vlgmr.msra.gmra.mrb[0].mxu1 %vm122_vm1, %v101_v5  ;;  %p577_p2 = pnand %p576_p1, %p570_p12 }
  0x65   :  { %408 = vmatpush3.bf16.msra.mxu1 %v449_v6  ;;  %411 = vmatprep.mubr.msk.bf16.mxu1 %vm609_vm0, %v608_v0 }
  0x66   :  { %409 = vmatprep.subr.bf16.mxu1 %v608_v0  ;;  %420 = vmatpush3.bf16.msra.mxu0 %v453_v12 }
  0x67   :  { %421 = vmatprep.subr.bf16.mxu0 %v608_v0 }
  0x69   :  { %410 = vmatpush3.bf16.msra.mxu1 %v450_v8 }
  0x6a   :  { %422 = vmatpush3.bf16.msra.mxu0 %v454_v14 }
  0x6b   :  { %423 = vmatprep.subr.bf16.mxu0 %v608_v0 }
  0x6c   :  { %412 = vmatmul.mubr.msk.bf16.vlgmr.msra.gmra.mrb[4].mxu1 %vm122_vm1, %v98_v13 }
  0x6e   :  { %424 = vmatpush3.bf16.msra.mxu0 %v455_v15 }
  0x6f   :  { %425 = vmatprep.subr.bf16.mxu0 %v608_v0 }
  0x72   :  { %426 = vmatpush3.bf16.msra.mxu0 %v456_v16 }
  0x73   :  { %427 = vmatprep.subr.bf16.mxu0 %v608_v0 }
  0x76   :  { %428 = vmatpush3.bf16.msra.mxu0 %v457_v17 }
  0x77   :  { %429 = vmatprep.subr.bf16.mxu0 %v608_v0 }
  0x7a   :  { %430 = vmatpush3.bf16.msra.mxu0 %v458_v18 }
 0x137   :  { %v160_v19 = vpop.f32.mrb[0].mxu1 }
 0x138   :  { %v405_v20 = vpop.f32.mrb[1].mxu1 }
 0x139   :  { %v163_v21 = vpop.f32.mrb[2].mxu1 }
 0x13a   :  { %v406_v22 = vpop.f32.mrb[3].mxu1 }
 0x13f   :  { %v216_v23 = vpop.f32.mrb[4].mxu1 }
 0x140   :  { %v217_v25 = vadd.f32 %v216_v23, %v160_v19  ;;  %v413_v26 = vpop.f32.mrb[5].mxu1 }
 0x141   :  { %v219_v27 = vpop.f32.mrb[6].mxu1 }
 0x142   :  { %v230_v28 = vadd.f32 %v374_v24, %v217_v25  ;;  %v220_v29 = vadd.f32 %v219_v27, %v163_v21  ;;  %v414_v30 = vpop.f32.mrb[7].mxu1 }
 0x144   :  { %v231_v31 = vadd.f32 %v374_v24, %v220_v29  ;;  %v232_v32 = vmax.f32 %v230_v28, 0.0 }
 0x146   :  { %v233_v33 = vmax.f32 %v231_v31, 0.0 }
 0x148   :  { %v234_v34 = vpack.c.bf16 %v233_v33, %v232_v32 }
 0x14a   :  { %432 = vmatmul.mubr.bf16.vlgmr.msra.gmra.mrb[0].mxu0 %v234_v34 }
 0x21d   :  { %v340_v36 = vpop.f32.mrb[0].mxu0 }
 0x21e   :  { %v341_v37 = vadd.f32 %v375_v35, %v340_v36  ;;  %v433_v38 = vpop.f32.mrb[1].mxu0 }
 0x21f   :  { %v343_v39 = vpop.f32.mrb[2].mxu0 }
 0x220   :  { %347 = vst [vmem:[#allocation11] sm:$0xff] %v341_v37  ;;  %v344_v40 = vadd.f32 %v375_v35, %v343_v39  ;;  %v434_v41 = vpop.f32.mrb[3].mxu0 }
 0x222   :  { %348 = vst [vmem:[#allocation11 + $0x8] sm:$0xff] %v344_v40 }
 0x223   :  { %580 = shalt.err (!%p577_p2)
}
 0x224   :  { %s581_s24 = scalar_lea.hbm %s759_s7, 256 }
 0x225   :  { %p582_p3 = scmp.ne.s32.totalorder %s759_s7, %s581_s24  ;;  %p585_p4 = scmp.lt.u32.totalorder %s581_s24, %s759_s7 }
 0x227   :  { %p587_p5 = pnand %p585_p4, %p582_p3 }
 0x229   :  { %590 = shalt.err (!%p587_p5)
}
 0x22a   :  { %360 = dma.vmem_to_hbm [thread:$0]  %s355_s22, 256, %s759_s7, [#allocation4], %s600_s11, %s600_s11, %s601_s12  }
 0x22b   :  { %597 = dma.done.wait [#allocation4], 256  }
 0x22c   :  { %598 = vsyncadd [#allocation4], 4294967040 }
 0x22d   :  { %364 = vsyncpa [#allocation3], 1 }
 0x22e   :  { %365 = vsyncpa [#allocation6], 1 }
 0x22f   :  { %366 = vsyncpa [#allocation9], 1 }
 0x230   :  { %367 = vsyncpa [#allocation4], 1 }

</bundles_post_ra>
